<compile_context>
chip_gen: v7x
topology: tpu7x:2x2x1
jax: 0.10.0
libtpu: 0.0.40
codegen_flags: <defaults>
</compile_context>

<pallas_src>
import jax
import jax.numpy as jnp
from jax import lax
from jax.experimental import pallas as pl
from jax.experimental.pallas import tpu as pltpu


def _round_up(x: int, m: int) -> int:
    return ((x + m - 1) // m) * m


def _vmem_budget_bytes() -> int:
    """Generation-aware VMEM budget (leave headroom below physical capacity)."""
    try:
        cap = int(pltpu.get_tpu_info().vmem_capacity_bytes)
    except Exception:
        cap = 64 * 1024 * 1024  # conservative lower bound (v7x per-TC)
    return max(int(cap * 0.75), 32 * 1024 * 1024)


def _pick_tm(B: int) -> int:
    """Pick the M tile minimizing padding waste; prefer larger tiles on ties."""
    candidates = (8, 16, 32, 64, 128, 256)
    wastes = [_round_up(max(B, 1), c) - B for c in candidates]
    min_waste = min(wastes)
    return max(c for c, w in zip(candidates, wastes) if w == min_waste)


# ---------------------------------------------------------------------------
# Kernels
# ---------------------------------------------------------------------------

def _nonneg_linear_resident_kernel(x_ref, w_ref, b_ref, o_ref):
    """Resident-weight path: one (tm, tn) output tile per step, full K.

    x_ref: (tm, K_p) bf16, w_ref: (tn, K_p) bf16 (PyTorch out x in layout),
    b_ref: (1, tn) f32, o_ref: (tm, tn).
    """
    # ReLU on the bf16 weight (free filler under the MXU on v6e/v7x; correct
    # everywhere).  Contract over in_features of both operands -> no transpose.
    w_nonneg = jnp.maximum(w_ref[...], 0)
    acc = lax.dot_general(
        x_ref[...],
        w_nonneg,
        dimension_numbers=(((1,), (1,)), ((), ())),
        preferred_element_type=jnp.float32,
    )
    o_ref[...] = (acc + b_ref[...]).astype(o_ref.dtype)


def _nonneg_linear_tiled_kernel(x_ref, w_ref, b_ref, o_ref, acc_ref):
    """Tiled path: (tm, tn) output tile, reduction over K on grid axis 2."""
    k = pl.program_id(2)

    @pl.when(k == 0)
    def _():
        acc_ref[...] = jnp.zeros_like(acc_ref)

    w_nonneg = jnp.maximum(w_ref[...], 0)
    acc_ref[...] += lax.dot_general(
        x_ref[...],
        w_nonneg,
        dimension_numbers=(((1,), (1,)), ((), ())),
        preferred_element_type=jnp.float32,
    )

    @pl.when(k == pl.num_programs(2) - 1)
    def _():
        o_ref[...] = (acc_ref[...] + b_ref[...]).astype(o_ref.dtype)


# ---------------------------------------------------------------------------
# Wrappers
# ---------------------------------------------------------------------------

def prepare_nonneg_linear_params(weight, bias=None):
    """One-time parameter prep (hoist out of the per-call hot path).

    Pads W/b to the (8,128) hardware minimum and casts W to bf16.  relu
    commutes with the bf16 cast, so doing relu in-kernel on the bf16 weight
    is bit-identical to relu(W)-then-cast.  Zero padding is exact (relu(0)=0).
    """
    out_f, in_f = weight.shape
    N_p = _round_up(out_f, 128)
    K_p = _round_up(in_f, 128)
    w_p = jnp.pad(weight, ((0, N_p - out_f), (0, K_p - in_f))).astype(jnp.bfloat16)
    if bias is None:
        bias = jnp.zeros((out_f,), dtype=jnp.float32)
    b_p = jnp.pad(bias.astype(jnp.float32), (0, N_p - out_f)).reshape(1, N_p)
    return w_p, b_p, out_f, in_f


def _call_resident(x_p, w_p, b_p, tm, tn, out_dtype, vmem_limit):
    M_p, K_p = x_p.shape
    N_p = w_p.shape[0]
    grid = (M_p // tm, N_p // tn)
    return pl.pallas_call(
        _nonneg_linear_resident_kernel,
        out_shape=jax.ShapeDtypeStruct((M_p, N_p), out_dtype),
        grid=grid,
        in_specs=[
            pl.BlockSpec((tm, K_p), lambda i, j: (i, 0)),   # x tile
            pl.BlockSpec((tn, K_p), lambda i, j: (j, 0)),   # resident weight
            pl.BlockSpec((1, tn), lambda i, j: (0, j)),     # bias
        ],
        out_specs=pl.BlockSpec((tm, tn), lambda i, j: (i, j)),
        compiler_params=pltpu.CompilerParams(
            dimension_semantics=("parallel", "parallel"),
            vmem_limit_bytes=vmem_limit,
        ),
    )(x_p, w_p, b_p)


def _call_tiled(x_p, w_p, b_p, tm, out_dtype, budget):
    M_p, K_p = x_p.shape
    N_p = w_p.shape[0]

    # Tile sizes must divide the (already 128-aligned) padded dims -> no extra
    # padding waste.  Prefer >=256 for the v6e/v7x 2x256x256 MXU.
    tn_candidates = [c for c in (512, 256, 128) if N_p % c == 0]
    tk_candidates = [c for c in (1024, 512, 256, 128) if K_p % c == 0]

    def footprint(tk_, tn_):
        return (2 * tm * tk_ * 2       # x, double-buffered bf16
                + 2 * tn_ * tk_ * 2    # w, double-buffered bf16
                + 2 * 4 * tn_          # bias, f32
                + 2 * tm * tn_ * 4     # out, double-buffered f32
                + tm * tn_ * 4)        # f32 accumulator

    tn, tk = tn_candidates[-1], tk_candidates[-1]
    for tn_ in tn_candidates:
        found = False
        for tk_ in tk_candidates:
            if footprint(tk_, tn_) <= budget:
                tn, tk = tn_, tk_
                found = True
                break
        if found:
            break

    grid = (M_p // tm, N_p // tn, K_p // tk)
    return pl.pallas_call(
        _nonneg_linear_tiled_kernel,
        out_shape=jax.ShapeDtypeStruct((M_p, N_p), out_dtype),
        grid=grid,
        in_specs=[
            pl.BlockSpec((tm, tk), lambda i, j, k: (i, k)),
            pl.BlockSpec((tn, tk), lambda i, j, k: (j, k)),
            pl.BlockSpec((1, tn), lambda i, j, k: (0, j)),
        ],
        out_specs=pl.BlockSpec((tm, tn), lambda i, j, k: (i, j)),
        scratch_shapes=[pltpu.VMEM((tm, tn), jnp.float32)],
        compiler_params=pltpu.CompilerParams(
            dimension_semantics=("parallel", "parallel", "arbitrary"),
            vmem_limit_bytes=budget,
        ),
    )(x_p, w_p, b_p)


def nonneg_linear_apply(x, w_p, b_p, out_f, in_f):
    """Hot forward path: only x is padded/cast per call."""
    orig_shape = x.shape
    assert orig_shape[-1] == in_f, "in_features mismatch"
    out_dtype = x.dtype
    x2d = x.reshape(-1, in_f)
    B = x2d.shape[0]
    N_p, K_p = w_p.shape

    tm = _pick_tm(B)
    M_p = _round_up(B, tm)
    x_p = jnp.pad(x2d, ((0, M_p - B), (0, K_p - in_f))).astype(jnp.bfloat16)

    budget = _vmem_budget_bytes()

    # Split N only when there is a single M block, so v7x's two TensorCores
    # both get work; otherwise keep W as one resident block (fetched once).
    m_blocks = M_p // tm
    tn = N_p // 2 if (m_blocks == 1 and N_p >= 256) else N_p

    resident_bytes = (2 * tm * K_p * 2      # x, double-buffered bf16
                      + 2 * tn * K_p * 2    # resident weight, bf16
                      + 2 * 4 * tn          # bias
                      + 2 * tm * tn * 4)    # out, double-buffered f32

    if resident_bytes <= budget:
        out_p = _call_resident(x_p, w_p, b_p, tm, tn, out_dtype, budget)
    else:
        out_p = _call_tiled(x_p, w_p, b_p, tm, out_dtype, budget)

    out = out_p[:B, :out_f]
    return out.reshape(*orig_shape[:-1], out_f)


def nonneg_linear(x, weight, bias=None):
    """y = x @ relu(weight).T + bias  (PIPNet NonNegLinear forward)."""
    w_p, b_p, out_f, in_f = prepare_nonneg_linear_params(weight, bias)
    return nonneg_linear_apply(x, w_p, b_p, out_f, in_f)


if __name__ == "__main__":
    # Small shapes consistent with the module (linear head on feature vectors).
    batch = 8
    in_features = 32
    out_features = 16

    key = jax.random.PRNGKey(0)
    kx, kw, kb = jax.random.split(key, 3)

    # Deterministic synthetic parameters; weight intentionally has negative
    # entries so the in-kernel ReLU matters.
    x = jax.random.normal(kx, (batch, in_features), dtype=jnp.float32)
    weight = jax.random.normal(kw, (out_features, in_features), dtype=jnp.float32)
    bias = jax.random.normal(kb, (out_features,), dtype=jnp.float32)
    # normalization_multiplier exists as a parameter but is unused in forward().
    normalization_multiplier = jnp.ones((1,), dtype=jnp.float32)

    # One-time parameter prep (hoisted out of the hot path), then forward.
    w_p, b_p, out_f, in_f = prepare_nonneg_linear_params(weight, bias)
    out = nonneg_linear_apply(x, w_p, b_p, out_f, in_f)
    out = jax.block_until_ready(out)
    assert out.shape == (batch, out_features)

    # Reference 1: exact bf16-operand / f32-accumulate math (what the MXU does).
    w_relu = jnp.maximum(weight, 0.0)
    ref_bf16 = (
        x.astype(jnp.bfloat16).astype(jnp.float32)
        @ w_relu.astype(jnp.bfloat16).astype(jnp.float32).T
        + bias
    )
    assert jnp.allclose(out, ref_bf16, atol=1e-3, rtol=1e-3)

    # Reference 2: the original f32 PyTorch semantics (looser tolerance due to
    # the bf16 MXU operands).
    ref_f32 = x @ w_relu.T + bias
    assert jnp.allclose(out, ref_f32, atol=1e-1, rtol=2e-2)

    # Also exercise a leading-batch reshape + non-multiple-of-8 row count
    # (padding path): x3 has 6 rows -> padded to 8 inside the wrapper.
    x3 = jax.random.normal(kx, (2, 3, in_features), dtype=jnp.float32)
    out3 = jax.block_until_ready(nonneg_linear_apply(x3, w_p, b_p, out_f, in_f))
    assert out3.shape == (2, 3, out_features)
    ref3 = (
        x3.reshape(-1, in_features).astype(jnp.bfloat16).astype(jnp.float32)
        @ w_relu.astype(jnp.bfloat16).astype(jnp.float32).T
        + bias
    ).reshape(2, 3, out_features)
    assert jnp.allclose(out3, ref3, atol=1e-3, rtol=1e-3)

    print("KERNEL_OK")
</pallas_src>

<mosaic_0001>
module attributes {stable_mosaic.version = 11 : i64} {
  func.func @_nonneg_linear_resident_kernel(%arg0: i32, %arg1: i32, %arg2: memref<8x128xbf16, #tpu.memory_space<vmem>>, %arg3: memref<128x128xbf16, #tpu.memory_space<vmem>>, %arg4: memref<1x128xf32, #tpu.memory_space<vmem>>, %arg5: memref<8x128xf32, #tpu.memory_space<vmem>>) attributes {dimension_semantics = [#tpu.dimension_semantics<parallel>, #tpu.dimension_semantics<parallel>], iteration_bounds = array<i64: 1, 1>, scalar_prefetch = 0 : i64, scratch_operands = 0 : i64, tpu.core_type = #tpu.core_type<tc>, window_params = [{transform_indices = @transform_0, window_bounds = array<i64: 8, 128>}, {transform_indices = @transform_1, window_bounds = array<i64: 128, 128>}, {transform_indices = @transform_2, window_bounds = array<i64: 1, 128>}, {transform_indices = @transform_3, window_bounds = array<i64: 8, 128>}]} {
    %c0 = arith.constant 0 : index
    %c0_0 = arith.constant 0 : index
    %0 = vector.load %arg3[%c0, %c0_0] : memref<128x128xbf16, #tpu.memory_space<vmem>>, vector<128x128xbf16>
    %cst = arith.constant 0.000000e+00 : bf16
    %1 = vector.broadcast %cst : bf16 to vector<128x128xbf16>
    %2 = arith.maximumf %0, %1 : vector<128x128xbf16>
    %c0_1 = arith.constant 0 : index
    %c0_2 = arith.constant 0 : index
    %3 = vector.load %arg2[%c0_1, %c0_2] : memref<8x128xbf16, #tpu.memory_space<vmem>>, vector<8x128xbf16>
    %cst_3 = arith.constant dense<0.000000e+00> : vector<8x128xf32>
    %4 = tpu.matmul %3, %2, %cst_3 {dimension_numbers = #tpu.dot_dimension_numbers<[1], [1], [0], [0], [0, 0, 1, 0], [], []>} : vector<8x128xbf16>, vector<128x128xbf16>, vector<8x128xf32> -> vector<8x128xf32>
    %c0_4 = arith.constant 0 : index
    %c0_5 = arith.constant 0 : index
    %5 = vector.load %arg4[%c0_4, %c0_5] : memref<1x128xf32, #tpu.memory_space<vmem>>, vector<1x128xf32>
    %6 = vector.broadcast %5 : vector<1x128xf32> to vector<8x128xf32>
    %7 = arith.addf %4, %6 : vector<8x128xf32>
    %c0_6 = arith.constant 0 : index
    %c0_7 = arith.constant 0 : index
    %8 = vector.load %arg5[%c0_6, %c0_7] : memref<8x128xf32, #tpu.memory_space<vmem>>, vector<8x128xf32>
    tpu.vector_store %arg5[%c0_6, %c0_7], %7 {strides = array<i32>} : memref<8x128xf32, #tpu.memory_space<vmem>>, vector<8x128xf32>,
    return
  }
  func.func @transform_0(%arg0: i32, %arg1: i32) -> (i32, i32) {
    %c0_i32 = arith.constant 0 : i32
    %c0_i32_0 = arith.constant 0 : i32
    return %arg0, %c0_i32 : i32, i32
  }
  func.func @transform_1(%arg0: i32, %arg1: i32) -> (i32, i32) {
    %c0_i32 = arith.constant 0 : i32
    %c0_i32_0 = arith.constant 0 : i32
    return %arg1, %c0_i32 : i32, i32
  }
  func.func @transform_2(%arg0: i32, %arg1: i32) -> (i32, i32) {
    %c0_i32 = arith.constant 0 : i32
    %c0_i32_0 = arith.constant 0 : i32
    return %c0_i32, %arg1 : i32, i32
  }
  func.func @transform_3(%arg0: i32, %arg1: i32) -> (i32, i32) {
    %c0_i32 = arith.constant 0 : i32
    return %arg0, %arg1 : i32, i32
  }
}

</mosaic_0001>

<bundles_post_ra>
// kernel: tpu_custom_call.1
= control target key start
LH: loop header
LB: loop body
LE: loop exit
PB: predicated region body
PF: predicated region fallthrough
CT: control target
= control target key end

     0   :  { %8 = vsyncpa [#allocation3], 0  ;;  %s379_s0 = inlined_call_operand.hbm [shape: bf16[8,128], index: 0, kind: input, shape index: {}]   ;;  %s380_s1 = inlined_call_operand.hbm [shape: bf16[128,128], index: 1, kind: input, shape index: {}]   ;;  %s381_s2 = inlined_call_operand.vmem [shape: f32[1,128], index: 2, kind: input, shape index: {}]   ;;  %s382_s3 = inlined_call_operand.hbm [shape: f32[8,128], index: 3, kind: output, shape index: {}]  }
   0x1   :  { %9 = vsyncpa [#allocation6], 0 }
   0x2   :  { %10 = vsyncpa [#allocation4], 0  ;;  %s305_s12 = smov [#allocation2]   ;;  %s306_s14 = smov [#allocation5]  }
   0x3   :  { %s17_s13 = sshll.u32 %s305_s12, 4  ;;  %s26_s15 = sshll.u32 %s306_s14, 4  ;;  %s18_s13 = int_to_ptr.vmem [resolvable:$true] %s17_s13  ;;  %s333_s15 = int_to_ptr.vmem [resolvable:$true] %s26_s15 }
   0x4   :  { %s233_s18 = scalar_lea.hbm %s379_s0, 64 }
   0x5   :  { %p234_p0 = scmp.ne.s32.totalorder %s379_s0, %s233_s18  ;;  %p237_p1 = scmp.lt.u32.totalorder %s233_s18, %s379_s0 }
   0x7   :  { %p239_p2 = pnand %p237_p1, %p234_p0 }
   0x9   :  { %242 = shalt.err (!%p239_p2)
}
   0xa   :  { %s243_s23 = scalar_lea.vmem %s18_s13, 64  ;;  %p248_p4 = scmp.lt.s32.totalorder %s18_s13, %s18_s13 }
   0xb   :  { %p244_p3 = scmp.ne.s32.totalorder %s18_s13, %s243_s23  ;;  %p249_p5 = scmp.lt.s32.totalorder %s243_s23, %s243_s23 }
   0xd   :  { %p250_p6 = por %p249_p5, %p248_p4 }
   0xf   :  { %p251_p7 = pnand %p250_p6, %p244_p3 }
  0x11   :  { %254 = shalt.err (!%p251_p7)
}
  0x12   :  { %20 = dma.hbm_to_vmem [thread:$0]  %s379_s0, 64, %s18_s13, [#allocation3]  }
  0x13   :  { %s255_s28 = scalar_lea.hbm %s380_s1, 1024 }
  0x14   :  { %p256_p8 = scmp.ne.s32.totalorder %s380_s1, %s255_s28  ;;  %p259_p9 = scmp.lt.u32.totalorder %s255_s28, %s380_s1 }
  0x16   :  { %p261_p10 = pnand %p259_p9, %p256_p8 }
  0x18   :  { %264 = shalt.err (!%p261_p10)
}
  0x19   :  { %s265_s6 = scalar_lea.vmem %s333_s15, 1024  ;;  %p270_p12 = scmp.lt.s32.totalorder %s333_s15, %s333_s15 }
  0x1a   :  { %p266_p11 = scmp.ne.s32.totalorder %s333_s15, %s265_s6  ;;  %p271_p13 = scmp.lt.s32.totalorder %s265_s6, %s265_s6 }
  0x1c   :  { %p272_p0 = por %p271_p13, %p270_p12 }
  0x1e   :  { %p273_p1 = pnand %p272_p0, %p266_p11 }
  0x20   :  { %276 = shalt.err (!%p273_p1)
}
  0x21   :  { %s307_s0 = smov 64   ;;  %s308_s7 = smov 4  }
  0x22   :  { %32 = dma.hbm_to_vmem [thread:$0]  %s380_s1, 1024, %s333_s15, [#allocation6], %s307_s0, %s307_s0, %s308_s7  }
  0x23   :  { %299 = dma.done.wait [#allocation3], 64  }
  0x24   :  { %300 = vsyncadd [#allocation3], 4294967232 }
  0x25   :  { %301 = dma.done.wait [#allocation6], 1024  }
  0x26   :  { %302 = vsyncadd [#allocation6], 4294966272  ;;  %v309_v0 = vmov 0.0   ;;  %vm310_vm0 = vmmov 0   ;;  %v42_v1 = vld [vmem:[#allocation5] sm:$0xf] }
  0x27   :  { %205 = vmatprep.subr.bf16.mxu0 %v309_v0  ;;  %221 = vmatprep.mubr.msk.bf16.mxu0 %vm310_vm0, %v309_v0  ;;  %v43_v2 = vld [vmem:[#allocation5 + $0x4] sm:$0xf]  ;;  %v311_v3 = vmov 0   ;;  %v44_v6 = vld [vmem:[#allocation5 + $0x8] sm:$0xf]  ;;  %s312_s11 = smov [#allocation7]  }
  0x28   :  { %v58_v4 = vmax.bf16 %v311_v3, %v42_v1  ;;  %v59_v5 = vmax.bf16 %v311_v3, %v43_v2  ;;  %v45_v7 = vld [vmem:[#allocation5 + $0xc] sm:$0xf]  ;;  %v60_v9 = vmax.bf16 %v311_v3, %v44_v6  ;;  %v46_v12 = vld [vmem:[#allocation5 + $0x10] sm:$0xf]  ;;  %v47_v13 = vld [vmem:[#allocation5 + $0x14] sm:$0xf] }
  0x29   :  { %v61_v10 = vmax.bf16 %v311_v3, %v45_v7  ;;  %v62_v14 = vmax.bf16 %v311_v3, %v46_v12  ;;  %v63_v15 = vmax.bf16 %v311_v3, %v47_v13  ;;  %v48_v17 = vld [vmem:[#allocation5 + $0x18] sm:$0xf]  ;;  %v49_v18 = vld [vmem:[#allocation5 + $0x1c] sm:$0xf]  ;;  %v50_v22 = vld [vmem:[#allocation5 + $0x20] sm:$0xf] }
  0x2a   :  { %v188_v8 = vcombine.low %v58_v4, %v59_v5  ;;  %v64_v19 = vmax.bf16 %v311_v3, %v48_v17  ;;  %v65_v20 = vmax.bf16 %v311_v3, %v49_v18  ;;  %v51_v23 = vld [vmem:[#allocation5 + $0x24] sm:$0xf]  ;;  %v66_v24 = vmax.bf16 %v311_v3, %v50_v22  ;;  %v52_v27 = vld [vmem:[#allocation5 + $0x28] sm:$0xf]  ;;  %v53_v28 = vld [vmem:[#allocation5 + $0x2c] sm:$0xf] }
  0x2b   :  { %v189_v11 = vcombine.low %v60_v9, %v61_v10  ;;  %v190_v16 = vcombine.low %v62_v14, %v63_v15  ;;  %v67_v25 = vmax.bf16 %v311_v3, %v51_v23  ;;  %v68_v29 = vmax.bf16 %v311_v3, %v52_v27  ;;  %v54_v32 = vld [vmem:[#allocation5 + $0x30] sm:$0xf]  ;;  %v55_v33 = vld [vmem:[#allocation5 + $0x34] sm:$0xf]  ;;  %v56_v37 = vld [vmem:[#allocation5 + $0x38] sm:$0xf] }
  0x2c   :  { %206 = vmatpush3.bf16.xpose.msra.mxu0 %v188_v8  ;;  %v191_v21 = vcombine.low %v64_v19, %v65_v20  ;;  %v69_v30 = vmax.bf16 %v311_v3, %v53_v28  ;;  %v70_v34 = vmax.bf16 %v311_v3, %v54_v32  ;;  %v71_v35 = vmax.bf16 %v311_v3, %v55_v33  ;;  %v57_v38 = vld [vmem:[#allocation5 + $0x3c] sm:$0xf]  ;;  %s177_s12 = sshll.u32 %s312_s11, 4  ;;  %s178_s12 = int_to_ptr.vmem [resolvable:$true] %s177_s12 }
  0x2d   :  { %207 = vmatprep.subr.bf16.mxu0 %v309_v0  ;;  %v192_v26 = vcombine.low %v66_v24, %v67_v25  ;;  %v72_v39 = vmax.bf16 %v311_v3, %v56_v37  ;;  %v73_v40 = vmax.bf16 %v311_v3, %v57_v38  ;;  %v74_v42 = vld [vmem:[#allocation2] sm:$0xf]  ;;  %s277_s13 = scalar_lea.vmem %s178_s12, 128  ;;  %p282_p3 = scmp.lt.s32.totalorder %s178_s12, %s178_s12 }
  0x2e   :  { %v193_v31 = vcombine.low %v68_v29, %v69_v30  ;;  %v194_v36 = vcombine.low %v70_v34, %v71_v35  ;;  %v187_v43 = vld [vmem:[%s381_s2] ss:$0 sm:$0xff]  ;;  %p278_p2 = scmp.ne.s32.totalorder %s178_s12, %s277_s13  ;;  %p283_p4 = scmp.lt.s32.totalorder %s277_s13, %s277_s13 }
  0x2f   :  { %v195_v41 = vcombine.low %v72_v39, %v73_v40 }
  0x30   :  { %p284_p5 = por %p283_p4, %p282_p3 }
  0x32   :  { %p285_p6 = pnand %p284_p5, %p278_p2 }
  0x34   :  { %208 = vmatpush3.bf16.xpose.msra.mxu0 %v189_v11 }
  0x35   :  { %209 = vmatprep.subr.bf16.mxu0 %v309_v0 }
  0x3c   :  { %210 = vmatpush3.bf16.xpose.msra.mxu0 %v190_v16 }
  0x3d   :  { %211 = vmatprep.subr.bf16.mxu0 %v309_v0 }
  0x44   :  { %212 = vmatpush3.bf16.xpose.msra.mxu0 %v191_v21 }
  0x45   :  { %213 = vmatprep.subr.bf16.mxu0 %v309_v0 }
  0x4c   :  { %214 = vmatpush3.bf16.xpose.msra.mxu0 %v192_v26 }
  0x4d   :  { %215 = vmatprep.subr.bf16.mxu0 %v309_v0 }
  0x54   :  { %216 = vmatpush3.bf16.xpose.msra.mxu0 %v193_v31 }
  0x55   :  { %217 = vmatprep.subr.bf16.mxu0 %v309_v0 }
  0x5c   :  { %218 = vmatpush3.bf16.xpose.msra.mxu0 %v194_v36 }
  0x5d   :  { %219 = vmatprep.subr.bf16.mxu0 %v309_v0 }
  0x64   :  { %220 = vmatpush3.bf16.xpose.msra.mxu0 %v195_v41 }
  0x6b   :  { %222 = vmatmul.mubr.bf16.vlgmr.msra.gmra.mrb[0].mxu0 %v74_v42 }
 0x13e   :  { %v164_v44 = vpop.f32.mrb[0].mxu0 }
 0x13f   :  { %v165_v45 = vadd.f32 %v187_v43, %v164_v44  ;;  %v223_v46 = vpop.f32.mrb[1].mxu0 }
 0x140   :  { %v167_v47 = vpop.f32.mrb[2].mxu0 }
 0x141   :  { %170 = vst [vmem:[#allocation7] sm:$0xff] %v165_v45  ;;  %v224_v48 = vpop.f32.mrb[3].mxu0 }
 0x142   :  { %288 = shalt.err (!%p285_p6)
}
 0x143   :  { %s289_s2 = scalar_lea.hbm %s382_s3, 128 }
 0x144   :  { %p290_p7 = scmp.ne.s32.totalorder %s382_s3, %s289_s2  ;;  %p293_p8 = scmp.lt.u32.totalorder %s289_s2, %s382_s3 }
 0x146   :  { %p295_p9 = pnand %p293_p8, %p290_p7 }
 0x148   :  { %298 = shalt.err (!%p295_p9)
}
 0x149   :  { %180 = dma.vmem_to_hbm [thread:$0]  %s178_s12, 128, %s382_s3, [#allocation4]  }
 0x14a   :  { %303 = dma.done.wait [#allocation4], 128  }
 0x14b   :  { %304 = vsyncadd [#allocation4], 4294967168 }
 0x14c   :  { %184 = vsyncpa [#allocation3], 1 }
 0x14d   :  { %185 = vsyncpa [#allocation6], 1 }
 0x14e   :  { %186 = vsyncpa [#allocation4], 1 }

</bundles_post_ra>
